<compile_context>
chip_gen: v7x
topology: tpu7x:2x2x1
jax: 0.10.0
libtpu: 0.0.40
codegen_flags: <defaults>
</compile_context>

<pallas_src>
import functools

import jax
import jax.numpy as jnp
from jax.experimental import pallas as pl
from jax.experimental.pallas import tpu as pltpu

H1, H2 = 24, 48          # hidden widths fixed by the module definition
_LANE = 128              # TPU lane width
_CHUNK = 512             # in-kernel sub-tile along the batch/lane axis


def _mlp_kernel(x_ref, w1_ref, b1_ref, w2_ref, b2_ref, w3_ref, b3_ref, o_ref,
                *, batch, tile_b, chunk):
    # x_ref: [F, tile_b] (batch on lanes)   o_ref: [A, tile_b]
    # w1: [H1, F]  w2: [H2, H1]  w3: [A, H2]   biases: [out, 1] (f32)
    w1 = w1_ref[...]
    w2 = w2_ref[...]
    w3 = w3_ref[...]
    b1 = b1_ref[...]
    b2 = b2_ref[...]
    b3 = b3_ref[...]
    act_dtype = x_ref.dtype                     # f32, or bf16 on v6e/v7x if requested

    ragged = (batch % tile_b) != 0              # static Python bool
    tile_start = pl.program_id(0) * tile_b      # traced scalar

    # Statically unrolled chunk loop: offsets are compile-time 128-aligned
    # constants; per-chunk temporaries die before the next chunk starts, so the
    # big DMA tile amortizes per-grid-step overhead without vreg spills.
    for c in range(tile_b // chunk):
        sl = pl.ds(c * chunk, chunk)
        x = x_ref[:, sl]                        # [F, chunk]
        if ragged:
            # Zero batch-padding lanes of the partial tile (deterministic; their
            # output columns are dropped by the masked store anyway -- batch
            # columns never mix in any op below).
            col = jax.lax.broadcasted_iota(jnp.int32, (1, chunk), 1) + (c * chunk)
            x = jnp.where(col < (batch - tile_start), x, jnp.zeros_like(x))

        # All three layers on the MXU, f32 accumulation; tanh in act_dtype so the
        # bf16 path uses the bf16 EUP on v6e/v7x.
        h1 = jnp.tanh(
            (jnp.dot(w1, x, preferred_element_type=jnp.float32) + b1).astype(act_dtype))
        h2 = jnp.tanh(
            (jnp.dot(w2, h1, preferred_element_type=jnp.float32) + b2).astype(act_dtype))
        out = jnp.dot(w3, h2, preferred_element_type=jnp.float32) + b3
        o_ref[:, sl] = out.astype(o_ref.dtype)  # lane-dense stores


def _pick_batch_tile(batch, tile_b_max):
    """Batch tile: multiple of 128, grows with B (up to tile_b_max), and keeps
    >=2 grid steps whenever B > 128 so both v7x TensorCores get work."""
    if batch <= _LANE:
        return _LANE
    tb = min(tile_b_max, pl.cdiv(pl.cdiv(batch, 2), _LANE) * _LANE)
    if tb >= _CHUNK:
        tb = (tb // _CHUNK) * _CHUNK            # inner chunk loop tiles exactly
    return tb


def approx_q_forward_feature_major(xt, w1, b1, w2, b2, w3, b3, *,
                                   tile_b_max=2048, compute_dtype=jnp.float32):
    """Core kernel entry point (no layout copies).

    xt: [n_features, B] feature-major (batch on lanes).  Weights in PyTorch
    layout [out, in], biases [out].  Returns [n_actions, B] float32.
    compute_dtype=jnp.bfloat16 is the optional v6e/v7x fast path (keep f32 on v5e).
    """
    F, B = xt.shape
    A = w3.shape[0]
    tb = _pick_batch_tile(B, tile_b_max)
    chunk = min(_CHUNK, tb)
    n_tiles = pl.cdiv(B, tb)

    cd = jnp.dtype(compute_dtype)
    xt = xt.astype(cd)
    w1c, w2c, w3c = (w.astype(cd) for w in (w1, w2, w3))
    b1c = b1.reshape(-1, 1).astype(jnp.float32)
    b2c = b2.reshape(-1, 1).astype(jnp.float32)
    b3c = b3.reshape(-1, 1).astype(jnp.float32)

    def resident(a):   # full-array block, constant index -> DMA'd once, stays in VMEM
        return pl.BlockSpec(a.shape, lambda i: (0, 0))

    cost = pl.CostEstimate(
        flops=2 * B * (F * H1 + H1 * H2 + H2 * A),
        transcendentals=B * (H1 + H2),
        bytes_accessed=int(cd.itemsize) * (B * F + w1.size + w2.size + w3.size)
        + 4 * (B * A + H1 + H2 + A),
    )

    kernel = functools.partial(_mlp_kernel, batch=B, tile_b=tb, chunk=chunk)

    return pl.pallas_call(
        kernel,
        out_shape=jax.ShapeDtypeStruct((A, B), jnp.float32),
        grid=(n_tiles,),
        in_specs=[
            pl.BlockSpec((F, tb), lambda i: (0, i)),     # x tile, pipelined over batch
            resident(w1c), resident(b1c),
            resident(w2c), resident(b2c),
            resident(w3c), resident(b3c),
        ],
        out_specs=pl.BlockSpec((A, tb), lambda i: (0, i)),  # lane-dense output
        compiler_params=pltpu.CompilerParams(
            dimension_semantics=("parallel",),           # megacore sharding on v7x
        ),
        cost_estimate=cost,
    )(xt, w1c, b1c, w2c, b2c, w3c, b3c)


def approx_q_network_forward(x, w1, b1, w2, b2, w3, b3, **kwargs):
    """PyTorch-facing wrapper: x [B, n_features] -> [B, n_actions].

    Upstream code that can keep activations feature-major should call
    approx_q_forward_feature_major directly; the two .T views here are the only
    extra layout passes left on this compatibility path.
    """
    out = approx_q_forward_feature_major(x.T, w1, b1, w2, b2, w3, b3, **kwargs)
    return out.T


def init_params(key, n_features, n_actions):
    """Deterministic PyTorch-style (uniform +- 1/sqrt(fan_in)) init, PyTorch layout."""
    keys = jax.random.split(key, 6)

    def linear(kw, kb, fan_in, fan_out):
        bound = 1.0 / jnp.sqrt(jnp.float32(fan_in))
        w = jax.random.uniform(kw, (fan_out, fan_in), jnp.float32, -bound, bound)
        b = jax.random.uniform(kb, (fan_out,), jnp.float32, -bound, bound)
        return w, b

    w1, b1 = linear(keys[0], keys[1], n_features, H1)
    w2, b2 = linear(keys[2], keys[3], H1, H2)
    w3, b3 = linear(keys[4], keys[5], H2, n_actions)
    return w1, b1, w2, b2, w3, b3


if __name__ == "__main__":
    n_features = 4
    n_actions = 2
    hidden_dimensions = 32   # accepted but unused, exactly like the module's __init__
    batch = 8

    key = jax.random.PRNGKey(0)
    k_x, k_p = jax.random.split(key)

    x = jax.random.normal(k_x, (batch, n_features), dtype=jnp.float32)
    params = init_params(k_p, n_features, n_actions)
    w1, b1, w2, b2, w3, b3 = params

    fwd = jax.jit(approx_q_network_forward)
    out = jax.block_until_ready(fwd(x, *params))

    # Pure-JAX reference (same math as the PyTorch forward, PyTorch weight layout).
    ref = jnp.tanh(x @ w1.T + b1)
    ref = jnp.tanh(ref @ w2.T + b2)
    ref = ref @ w3.T + b3

    assert out.shape == (batch, n_actions)
    assert jnp.allclose(out, ref, atol=1e-5, rtol=1e-5)

    print("KERNEL_OK")
</pallas_src>

<mosaic_0001>
module attributes {stable_mosaic.version = 11 : i64} {
  func.func @_mlp_kernel(%arg0: i32, %arg1: memref<4x128xf32, #tpu.memory_space<vmem>>, %arg2: memref<24x4xf32, #tpu.memory_space<vmem>>, %arg3: memref<24x1xf32, #tpu.memory_space<vmem>>, %arg4: memref<48x24xf32, #tpu.memory_space<vmem>>, %arg5: memref<48x1xf32, #tpu.memory_space<vmem>>, %arg6: memref<2x48xf32, #tpu.memory_space<vmem>>, %arg7: memref<2x1xf32, #tpu.memory_space<vmem>>, %arg8: memref<2x128xf32, #tpu.memory_space<vmem>>) attributes {dimension_semantics = [#tpu.dimension_semantics<parallel>], iteration_bounds = array<i64: 1>, scalar_prefetch = 0 : i64, scratch_operands = 0 : i64, tpu.core_type = #tpu.core_type<tc>, window_params = [{transform_indices = @transform_0, window_bounds = array<i64: 4, 128>}, {pipeline_mode = #tpu.pipeline_mode<synchronous>, transform_indices = @transform_1, window_bounds = array<i64: 24, 4>}, {pipeline_mode = #tpu.pipeline_mode<synchronous>, transform_indices = @transform_2, window_bounds = array<i64: 24, 1>}, {pipeline_mode = #tpu.pipeline_mode<synchronous>, transform_indices = @transform_3, window_bounds = array<i64: 48, 24>}, {pipeline_mode = #tpu.pipeline_mode<synchronous>, transform_indices = @transform_4, window_bounds = array<i64: 48, 1>}, {pipeline_mode = #tpu.pipeline_mode<synchronous>, transform_indices = @transform_5, window_bounds = array<i64: 2, 48>}, {pipeline_mode = #tpu.pipeline_mode<synchronous>, transform_indices = @transform_6, window_bounds = array<i64: 2, 1>}, {transform_indices = @transform_7, window_bounds = array<i64: 2, 128>}]} {
    %c0 = arith.constant 0 : index
    %c0_0 = arith.constant 0 : index
    %0 = vector.load %arg2[%c0, %c0_0] : memref<24x4xf32, #tpu.memory_space<vmem>>, vector<24x4xf32>
    %c0_1 = arith.constant 0 : index
    %c0_2 = arith.constant 0 : index
    %1 = vector.load %arg4[%c0_1, %c0_2] : memref<48x24xf32, #tpu.memory_space<vmem>>, vector<48x24xf32>
    %c0_3 = arith.constant 0 : index
    %c0_4 = arith.constant 0 : index
    %2 = vector.load %arg6[%c0_3, %c0_4] : memref<2x48xf32, #tpu.memory_space<vmem>>, vector<2x48xf32>
    %c0_5 = arith.constant 0 : index
    %c0_6 = arith.constant 0 : index
    %3 = vector.load %arg3[%c0_5, %c0_6] : memref<24x1xf32, #tpu.memory_space<vmem>>, vector<24x1xf32>
    %c0_7 = arith.constant 0 : index
    %c0_8 = arith.constant 0 : index
    %4 = vector.load %arg5[%c0_7, %c0_8] : memref<48x1xf32, #tpu.memory_space<vmem>>, vector<48x1xf32>
    %c0_9 = arith.constant 0 : index
    %c0_10 = arith.constant 0 : index
    %5 = vector.load %arg7[%c0_9, %c0_10] : memref<2x1xf32, #tpu.memory_space<vmem>>, vector<2x1xf32>
    %c128_i32 = arith.constant 128 : i32
    %6 = arith.muli %arg0, %c128_i32 : i32
    %c0_11 = arith.constant 0 : index
    %c0_12 = arith.constant 0 : index
    %7 = vector.load %arg1[%c0_11, %c0_12] : memref<4x128xf32, #tpu.memory_space<vmem>>, vector<4x128xf32>
    %8 = tpu.iota {dimensions = array<i32: 1>} : vector<1x128xi32>
    %c0_i32 = arith.constant 0 : i32
    %9 = vector.broadcast %c0_i32 : i32 to vector<1x128xi32>
    %10 = arith.addi %8, %9 : vector<1x128xi32>
    %c8_i32 = arith.constant 8 : i32
    %11 = arith.subi %c8_i32, %6 : i32
    %12 = vector.broadcast %11 : i32 to vector<1x128xi32>
    %13 = arith.cmpi slt, %10, %12 : vector<1x128xi32>
    %cst = arith.constant 0.000000e+00 : f32
    %14 = vector.broadcast %cst : f32 to vector<4x128xf32>
    %15 = vector.shape_cast %13 : vector<1x128xi1> to vector<1x128xi1>
    %16 = vector.broadcast %15 : vector<1x128xi1> to vector<4x128xi1>
    %17 = arith.select %16, %7, %14 : vector<4x128xi1>, vector<4x128xf32>
    %cst_13 = arith.constant dense<0.000000e+00> : vector<24x128xf32>
    %18 = tpu.matmul %0, %17, %cst_13 {dimension_numbers = #tpu.dot_dimension_numbers<[1], [0], [0], [1], [0, 0, 1, 1], [], []>} : vector<24x4xf32>, vector<4x128xf32>, vector<24x128xf32> -> vector<24x128xf32>
    %19 = vector.broadcast %3 : vector<24x1xf32> to vector<24x128xf32>
    %20 = arith.addf %18, %19 : vector<24x128xf32>
    %21 = math.tanh %20 : vector<24x128xf32>
    %cst_14 = arith.constant dense<0.000000e+00> : vector<48x128xf32>
    %22 = tpu.matmul %1, %21, %cst_14 {dimension_numbers = #tpu.dot_dimension_numbers<[1], [0], [0], [1], [0, 0, 1, 1], [], []>} : vector<48x24xf32>, vector<24x128xf32>, vector<48x128xf32> -> vector<48x128xf32>
    %23 = vector.broadcast %4 : vector<48x1xf32> to vector<48x128xf32>
    %24 = arith.addf %22, %23 : vector<48x128xf32>
    %25 = math.tanh %24 : vector<48x128xf32>
    %cst_15 = arith.constant dense<0.000000e+00> : vector<2x128xf32>
    %26 = tpu.matmul %2, %25, %cst_15 {dimension_numbers = #tpu.dot_dimension_numbers<[1], [0], [0], [1], [0, 0, 1, 1], [], []>} : vector<2x48xf32>, vector<48x128xf32>, vector<2x128xf32> -> vector<2x128xf32>
    %27 = vector.broadcast %5 : vector<2x1xf32> to vector<2x128xf32>
    %28 = arith.addf %26, %27 : vector<2x128xf32>
    %c0_16 = arith.constant 0 : index
    %c0_17 = arith.constant 0 : index
    %29 = vector.load %arg8[%c0_16, %c0_17] : memref<2x128xf32, #tpu.memory_space<vmem>>, vector<2x128xf32>
    tpu.vector_store %arg8[%c0_16, %c0_17], %28 {strides = array<i32>} : memref<2x128xf32, #tpu.memory_space<vmem>>, vector<2x128xf32>,
    return
  }
  func.func @transform_0(%arg0: i32) -> (i32, i32) {
    %c0_i32 = arith.constant 0 : i32
    %c0_i32_0 = arith.constant 0 : i32
    return %c0_i32, %arg0 : i32, i32
  }
  func.func @transform_1(%arg0: i32) -> (i32, i32) {
    %c0_i32 = arith.constant 0 : i32
    %c0_i32_0 = arith.constant 0 : i32
    %c0_i32_1 = arith.constant 0 : i32
    return %c0_i32, %c0_i32_0 : i32, i32
  }
  func.func @transform_2(%arg0: i32) -> (i32, i32) {
    %c0_i32 = arith.constant 0 : i32
    %c0_i32_0 = arith.constant 0 : i32
    %c0_i32_1 = arith.constant 0 : i32
    return %c0_i32, %c0_i32_0 : i32, i32
  }
  func.func @transform_3(%arg0: i32) -> (i32, i32) {
    %c0_i32 = arith.constant 0 : i32
    %c0_i32_0 = arith.constant 0 : i32
    %c0_i32_1 = arith.constant 0 : i32
    return %c0_i32, %c0_i32_0 : i32, i32
  }
  func.func @transform_4(%arg0: i32) -> (i32, i32) {
    %c0_i32 = arith.constant 0 : i32
    %c0_i32_0 = arith.constant 0 : i32
    %c0_i32_1 = arith.constant 0 : i32
    return %c0_i32, %c0_i32_0 : i32, i32
  }
  func.func @transform_5(%arg0: i32) -> (i32, i32) {
    %c0_i32 = arith.constant 0 : i32
    %c0_i32_0 = arith.constant 0 : i32
    %c0_i32_1 = arith.constant 0 : i32
    return %c0_i32, %c0_i32_0 : i32, i32
  }
  func.func @transform_6(%arg0: i32) -> (i32, i32) {
    %c0_i32 = arith.constant 0 : i32
    %c0_i32_0 = arith.constant 0 : i32
    %c0_i32_1 = arith.constant 0 : i32
    return %c0_i32, %c0_i32_0 : i32, i32
  }
  func.func @transform_7(%arg0: i32) -> (i32, i32) {
    %c0_i32 = arith.constant 0 : i32
    %c0_i32_0 = arith.constant 0 : i32
    return %c0_i32, %arg0 : i32, i32
  }
}

</mosaic_0001>

<bundles_post_ra>
// kernel: approx_q_network_forward.1
= control target key start
LH: loop header
LB: loop body
LE: loop exit
PB: predicated region body
PF: predicated region fallthrough
CT: control target
= control target key end

     0   :  { %v49_v0 = vlaneseq  ;;  %v547_v1 = vmov 0.0   ;;  %vm548_vm0 = vmmov 0   ;;  %v549_v5 = vmov 0   ;;  %s680_s0 = inlined_call_operand.vmem [shape: f32[4,8], index: 0, kind: input, shape index: {}]   ;;  %s681_s1 = inlined_call_operand.vmem [shape: f32[24,4], index: 1, kind: input, shape index: {}]   ;;  %s682_s2 = inlined_call_operand.vmem [shape: f32[24,1], index: 2, kind: input, shape index: {}]   ;;  %s683_s3 = inlined_call_operand.vmem [shape: f32[48,24], index: 3, kind: input, shape index: {}]   ;;  %s684_s4 = inlined_call_operand.vmem [shape: f32[48,1], index: 4, kind: input, shape index: {}]   ;;  %s685_s5 = inlined_call_operand.vmem [shape: f32[2,48], index: 5, kind: input, shape index: {}]   ;;  %s686_s6 = inlined_call_operand.vmem [shape: f32[2,1], index: 6, kind: input, shape index: {}]   ;;  %s687_s7 = inlined_call_operand.hbm [shape: f32[2,8], index: 7, kind: output, shape index: {}]  }
   0x1   :  { %444 = vmatprep.subr.mxu0 %v547_v1  ;;  %446 = vmatprep.mubr.msk.f32.mxu0 %vm548_vm0, %v547_v1  ;;  %v37_v2 = vld [vmem:[%s682_s2] sm:$0xff]  ;;  %v39_v6 = vld [vmem:[%s682_s2 + $0x10] sm:$0xff]  ;;  %vm82_vm1 = vcmask 1043456   ;;  %vm72_vm3 = vcmask 31744   ;;  %v38_v8 = vld [vmem:[%s682_s2 + $0x8] sm:$0xff] }
   0x2   :  { %v48_v3 = vld [vmem:[%s680_s0] sm:$0xf]  ;;  %v50_v4 = vand.u32 127, %v49_v0  ;;  %503 = vset.pattern.permute.xlu0 %v549_v5  ;;  %504 = vset.pattern.permute.xlu1 %v549_v5 }
   0x3   :  { %59 = vperm.xlu0 %503, %v37_v2   ;;  %69 = vperm.xlu1 %504, %v39_v6   ;;  %v27_v7 = vld [vmem:[%s681_s1] sm:$0xff] }
   0x4   :  { %vm53_vm2 = vcmp.lt.s32.totalorder %v50_v4, 8  ;;  %v40_v10 = vld [vmem:[%s684_s4] sm:$0xff] }
   0x5   :  { %v56_v9 = vsel %vm53_vm2, %v48_v3, 0.0 }
   0x6   :  { %12 = vsyncpa [#allocation3], 0  ;;  %445 = vmatpush3.msk.msra.mxu0 %vm82_vm1, %v56_v9  ;;  %v28_v11 = vld [vmem:[%s681_s1 + $0x8] sm:$0xff]  ;;  %v42_v13 = vld [vmem:[%s684_s4 + $0x10] sm:$0xff]  ;;  %vm199_vm4 = vcmask 195584   ;;  %v550_v41 = vmov 0.0|0.0  }
   0x7   :  { %447 = vmatmul.mubr.msk.f32.vlgmr.msra.gmra.mrb[0].mxu0 %vm72_vm3, %v27_v7  ;;  %64 = vperm.xlu0 %503, %v38_v8   ;;  %v41_v12 = vld [vmem:[%s684_s4 + $0x8] sm:$0xff]  ;;  %v29_v14 = vld [vmem:[%s681_s1 + $0x10] sm:$0xff]  ;;  %v43_v15 = vld [vmem:[%s684_s4 + $0x18] sm:$0xff]  ;;  %vm324_vm5 = vcmask 392192   ;;  %s551_s13 = smov [#allocation2]  }
   0x8   :  { %449 = vmatprep.mubr.msk.f32.mxu0 %vm548_vm0, %v547_v1  ;;  %171 = vperm.xlu1 %504, %v40_v10   ;;  %v44_v16 = vld [vmem:[%s684_s4 + $0x20] sm:$0xff]  ;;  %v45_v17 = vld [vmem:[%s684_s4 + $0x28] sm:$0xff]  ;;  %v32_v37 = vld [vmem:[%s683_s3 + $0x10] sm:$0xff]  ;;  %s405_s14 = sshll.u32 %s551_s13, 4  ;;  %s406_s14 = int_to_ptr.vmem [resolvable:$true] %s405_s14 }
   0x9   :  { %v46_v18 = vld [vmem:[%s686_s6] sm:$0x3]  ;;  %v31_v36 = vld [vmem:[%s683_s3 + $0x8] sm:$0xff]  ;;  %v33_v38 = vld [vmem:[%s683_s3 + $0x18] sm:$0xff]  ;;  %489 = vmatprep.subr.bf16.mxu0 %v550_v41  ;;  %s523_s15 = scalar_lea.vmem %s406_s14, 32  ;;  %p528_p1 = scmp.lt.s32.totalorder %s406_s14, %s406_s14 }
   0xa   :  { %v30_v19 = vld [vmem:[%s683_s3] sm:$0xff]  ;;  %v35_v40 = vld [vmem:[%s683_s3 + $0x28] sm:$0xff]  ;;  %p524_p0 = scmp.ne.s32.totalorder %s406_s14, %s523_s15  ;;  %p529_p2 = scmp.lt.s32.totalorder %s523_s15, %s523_s15 }
   0xb   :  { %450 = vmatmul.mubr.msk.f32.gmra.mrb[2].mxu0 %vm72_vm3, %v28_v11  ;;  %176 = vperm.xlu0 %503, %v41_v12   ;;  %v34_v39 = vld [vmem:[%s683_s3 + $0x20] sm:$0xff] }
   0xc   :  { %452 = vmatprep.mubr.msk.f32.mxu0 %vm548_vm0, %v547_v1  ;;  %181 = vperm.xlu1 %504, %v42_v13   ;;  %v36_v5 = vld [vmem:[%s685_s5] sm:$0x3]  ;;  %p530_p3 = por %p529_p2, %p528_p1 }
   0xd   :  { %461 = vmatprep.mubr.msk.f32.mxu1 %vm199_vm4, %v30_v19 }
   0xe   :  { %p531_p4 = pnand %p530_p3, %p524_p0 }
   0xf   :  { %453 = vmatmul.mubr.msk.f32.gmra.mrb[4].mxu0 %vm72_vm3, %v29_v14  ;;  %186 = vperm.xlu0 %503, %v43_v15  }
  0x10   :  { %191 = vperm.xlu1 %504, %v44_v16   ;;  %482 = vmatprep.mubr.msk.f32.mxu0 %vm548_vm0, %v547_v1 }
  0x13   :  { %196 = vperm.xlu0 %503, %v45_v17  }
  0x14   :  { %321 = vperm.xlu1 %504, %v46_v18  }
  0x82   :  { %v60_v20 = vpop.permute.xlu0 %59  ;;  %v70_v28 = vpop.permute.xlu1 %69 }
  0x86   :  { %v65_v24 = vpop.permute.xlu0 %64 }
  0x87   :  { %v172_v43 = vpop.permute.xlu1 %171 }
  0x8a   :  { %v177_v42 = vpop.permute.xlu0 %176 }
  0x8b   :  { %v182_v49 = vpop.permute.xlu1 %181 }
  0x8e   :  { %v187_v47 = vpop.permute.xlu0 %186 }
  0x8f   :  { %v192_v56 = vpop.permute.xlu1 %191 }
  0x92   :  { %v197_v54 = vpop.permute.xlu0 %196 }
  0x93   :  { %v322_v6 = vpop.permute.xlu1 %321 }
  0xda   :  { %v152_v21 = vpop.f32.mrb[0].mxu0 }
  0xdb   :  { %v448_v22 = vpop.f32.mrb[1].mxu0  ;;  %v153_v23 = vadd.f32 %v152_v21, %v60_v20 }
  0xdd   :  { %505 = vtanh.f32 %v153_v23 }
  0xde   :  { %v157_v25 = vpop.f32.mrb[2].mxu0 }
  0xdf   :  { %v158_v26 = vadd.f32 %v157_v25, %v65_v24  ;;  %v451_v27 = vpop.f32.mrb[3].mxu0 }
  0xe1   :  { %507 = vtanh.f32 %v158_v26 }
  0xe2   :  { %v162_v29 = vpop.f32.mrb[4].mxu0 }
  0xe3   :  { %v163_v30 = vadd.f32 %v162_v29, %v70_v28  ;;  %v454_v31 = vpop.f32.mrb[5].mxu0 }
  0xe5   :  { %509 = vtanh.f32 %v163_v30 }
  0xe7   :  { %v506_v32 = vpop.eup %505 }
  0xeb   :  { %v508_v33 = vpop.eup %507 }
  0xec   :  { %v485_v34 = vpack.c.bf16 %v508_v33, %v506_v32 }
  0xee   :  { %486 = vmatprep.subr.bf16.mxu1 %v485_v34 }
  0xef   :  { %v510_v35 = vpop.eup %509  ;;  %488 = vmatpush3.bf16.msra.mxu1 %v485_v34 }
  0xf0   :  { %459 = vmatprep.subr.mxu1 %v510_v35 }
  0xf3   :  { %460 = vmatpush3.msra.mxu1 %v510_v35 }
  0xf4   :  { %462 = vmatmul.mubr.msk.f32.vlgmr.msra.gmra.mrb[0].mxu1 %vm199_vm4, %v31_v36 }
  0xf5   :  { %464 = vmatprep.mubr.msk.f32.mxu1 %vm199_vm4, %v32_v37 }
  0xf8   :  { %465 = vmatmul.mubr.msk.f32.gmra.mrb[2].mxu1 %vm199_vm4, %v33_v38 }
  0xf9   :  { %467 = vmatprep.mubr.msk.f32.mxu1 %vm199_vm4, %v34_v39 }
  0xfc   :  { %468 = vmatmul.mubr.msk.f32.gmra.mrb[4].mxu1 %vm199_vm4, %v35_v40 }
 0x1c7   :  { %v463_v44 = vpop.f32.mrb[0].mxu1 }
 0x1c8   :  { %v290_v45 = vadd.f32 %v463_v44, %v177_v42  ;;  %v284_v46 = vpop.f32.mrb[1].mxu1 }
 0x1c9   :  { %v285_v48 = vadd.f32 %v284_v46, %v172_v43 }
 0x1ca   :  { %511 = vtanh.f32 %v290_v45 }
 0x1cb   :  { %513 = vtanh.f32 %v285_v48  ;;  %v466_v50 = vpop.f32.mrb[2].mxu1 }
 0x1cc   :  { %v300_v51 = vadd.f32 %v466_v50, %v187_v47  ;;  %v294_v52 = vpop.f32.mrb[3].mxu1 }
 0x1cd   :  { %v295_v53 = vadd.f32 %v294_v52, %v182_v49 }
 0x1ce   :  { %515 = vtanh.f32 %v300_v51 }
 0x1cf   :  { %517 = vtanh.f32 %v295_v53  ;;  %v469_v55 = vpop.f32.mrb[4].mxu1 }
 0x1d0   :  { %v310_v57 = vadd.f32 %v469_v55, %v197_v54  ;;  %v304_v58 = vpop.f32.mrb[5].mxu1 }
 0x1d1   :  { %v305_v59 = vadd.f32 %v304_v58, %v192_v56 }
 0x1d2   :  { %519 = vtanh.f32 %v310_v57 }
 0x1d3   :  { %521 = vtanh.f32 %v305_v59 }
 0x1d4   :  { %v512_v60 = vpop.eup %511 }
 0x1d5   :  { %v514_v61 = vpop.eup %513 }
 0x1d6   :  { %v490_v62 = vpack.c.bf16 %v512_v60, %v514_v61 }
 0x1d8   :  { %v516_v63 = vpop.eup %515  ;;  %491 = vmatpush3.bf16.msra.mxu0 %v490_v62 }
 0x1d9   :  { %v518_v0 = vpop.eup %517  ;;  %492 = vmatprep.subr.bf16.mxu0 %v550_v41 }
 0x1da   :  { %v493_v1 = vpack.c.bf16 %v516_v63, %v518_v0 }
 0x1dc   :  { %v520_v2 = vpop.eup %519  ;;  %494 = vmatpush3.bf16.msra.mxu0 %v493_v1 }
 0x1dd   :  { %v522_v3 = vpop.eup %521  ;;  %495 = vmatprep.subr.bf16.mxu0 %v550_v41 }
 0x1de   :  { %v496_v4 = vpack.c.bf16 %v520_v2, %v522_v3 }
 0x1e0   :  { %497 = vmatpush3.bf16.msra.mxu0 %v496_v4 }
 0x1e3   :  { %483 = vmatmul.mubr.msk.f32.vlgmr.msra.gmra.mrb[6].mxu0 %vm324_vm5, %v36_v5 }
 0x2b6   :  { %v394_v7 = vpop.f32.mrb[6].mxu0 }
 0x2b7   :  { %v395_v8 = vadd.f32 %v394_v7, %v322_v6  ;;  %v484_v9 = vpop.f32.mrb[7].mxu0 }
 0x2b9   :  { %398 = vst [vmem:[#allocation2] sm:$0x3] %v395_v8 }
 0x2ba   :  { %534 = shalt.err (!%p531_p4)
}
 0x2bb   :  { %s535_s5 = scalar_lea.hbm %s687_s7, 32 }
 0x2bc   :  { %p536_p5 = scmp.ne.s32.totalorder %s687_s7, %s535_s5  ;;  %p539_p6 = scmp.lt.u32.totalorder %s535_s5, %s687_s7 }
 0x2be   :  { %p541_p7 = pnand %p539_p6, %p536_p5 }
 0x2c0   :  { %544 = shalt.err (!%p541_p7)
}
 0x2c1   :  { %408 = dma.vmem_to_hbm [thread:$0]  %s406_s14, 32, %s687_s7, [#allocation3]  }
 0x2c2   :  { %545 = dma.done.wait [#allocation3], 32  }
 0x2c3   :  { %546 = vsyncadd [#allocation3], 4294967264 }
 0x2c4   :  { %412 = vsyncpa [#allocation3], 1 }

</bundles_post_ra>
